<compile_context>
chip_gen: v6e
topology: v6e:2x2x1
jax: 0.10.0
libtpu: 0.0.40
codegen_flags: <defaults>
</compile_context>

<pallas_src>
import functools

import jax
import jax.numpy as jnp
from jax.experimental import pallas as pl
from jax.experimental.pallas import tpu as pltpu

K = 4            # conv kernel size
STRIDE = 2
PAD = 1
EPS = 1e-5       # nn.InstanceNorm2d default eps
NEG_SLOPE = 0.2


def _padded_bytes(shape, itemsize):
    """Rough VMEM footprint of a block after (8, 128) sublane/lane padding."""
    lanes = -(-int(shape[-1]) // 128) * 128
    subl = -(-int(shape[-2]) // 8) * 8
    lead = 1
    for d in shape[:-2]:
        lead *= int(d)
    return lead * subl * lanes * itemsize


def _unet_down_kernel(x_ref, w_ref, o_ref, *, wh, w_out, h_out):
    # x_ref: (1, Lin_pad, 4*C_in) bf16 -- space-to-depth packed, spatially
    #        flattened padded sample: row i*wh + j, lane (p*2+q)*C_in + c
    #        equals x_pad[2i+p, 2j+q, c].
    # w_ref: (16*C_in, C_out_pad)  bf16 -- tap-stacked weights, tap order
    #        (a, b) = (0,0),(0,1),(1,0),(1,1), inner order (p, q, c).
    # o_ref: (1, L, C_out_pad)     L = h_out*wh rows; column wh-1 of every
    #        output row is junk and is sliced off host-side.
    L = h_out * wh
    nvalid = h_out * w_out
    cin4 = x_ref.shape[2]

    x = x_ref[0]                                            # (Lin_pad, 4*C_in) bf16
    # The 4 taps of the (now 2x2, stride-1) conv are contiguous row shifts.
    taps = [x[off:off + L, :] for off in (0, 1, wh, wh + 1)]

    if cin4 < 128:
        # Small C_in: stack the taps along lanes and run ONE MXU dot with
        # K = 16*C_in.  All accumulation happens inside the MXU; the bf16
        # staging copy is cheaper than 4 mostly-empty dots + 3 f32 VPU adds.
        xcat = jnp.concatenate(taps, axis=-1)               # (L, 16*C_in) bf16
        acc = jnp.dot(xcat, w_ref[...], preferred_element_type=jnp.float32)
    else:
        # Large C_in: contraction lanes are already full at K = 4*C_in; skip
        # the 4x staging duplication and accumulate 4 full-K dots.
        acc = jnp.dot(taps[0], w_ref[0:cin4, :],
                      preferred_element_type=jnp.float32)
        for t in range(1, 4):
            acc = acc + jnp.dot(taps[t], w_ref[t * cin4:(t + 1) * cin4, :],
                                preferred_element_type=jnp.float32)

    # Valid-column mask (column wh-1 of every output row is junk).
    col = jax.lax.broadcasted_iota(jnp.int32, (L, 1), 0) % wh
    valid = col < w_out

    # InstanceNorm2d (affine=False): two-pass stats over the valid pixels only.
    inv_n = jnp.float32(1.0 / nvalid)
    mean = jnp.sum(jnp.where(valid, acc, 0.0), axis=0, keepdims=True) * inv_n
    centered = acc - mean
    var = jnp.sum(jnp.where(valid, centered * centered, 0.0),
                  axis=0, keepdims=True) * inv_n
    y = centered * jax.lax.rsqrt(var + EPS)

    # LeakyReLU(0.2)
    o_ref[0] = jnp.where(y >= 0, y, NEG_SLOPE * y).astype(o_ref.dtype)


def unet_down(x, weight, *, channels_last_in=False, channels_last_out=False,
              out_dtype=None):
    """x: (N, C_in, H, W) (or NHWC if channels_last_in); weight: (C_out, C_in, 4, 4)
    in PyTorch layout.  Returns (N, C_out, H//2, W//2) (or NHWC if
    channels_last_out)."""
    if channels_last_in:
        n, h, w, c_in = x.shape
        xh = x.astype(jnp.bfloat16)
    else:
        n, c_in, h, w = x.shape
        # Cast BEFORE the layout transpose so the relayout pass moves bf16.
        xh = jnp.transpose(x.astype(jnp.bfloat16), (0, 2, 3, 1))
    c_out = weight.shape[0]
    assert weight.shape == (c_out, c_in, K, K)
    assert h % 2 == 0 and w % 2 == 0, "k=4, s=2, p=1 downsample expects even H, W"

    h_out, w_out = h // 2, w // 2
    hh, wh = h_out + 1, w_out + 1
    l_out = h_out * wh                          # kernel output rows per sample
    c_out_pad = -(-c_out // 128) * 128          # lane-dense output stores
    cin4 = 4 * c_in
    out_dtype = x.dtype if out_dtype is None else out_dtype

    # ---- host prep: one bf16 relayout pass (space-to-depth, no duplication) ----
    x_pad = jnp.pad(xh, ((0, 0), (PAD, PAD), (PAD, PAD), (0, 0)))
    s2d = x_pad.reshape(n, hh, 2, wh, 2, c_in)
    s2d = jnp.transpose(s2d, (0, 1, 3, 2, 4, 5)).reshape(n, hh * wh, cin4)
    # Pad rows: tap (1,1) of the (junk) last output column reads one row past
    # the end of the flattened image; round up to a sublane multiple.
    lin_pad = -(-(hh * wh + 1) // 8) * 8
    s2d = jnp.pad(s2d, ((0, 0), (0, lin_pad - hh * wh), (0, 0)))

    # weight (C_out, C_in, 4, 4) -> (16*C_in, C_out_pad):
    #   kh = 2a+p, kw = 2b+q; row index = (a*2+b)*4*C_in + (p*2+q)*C_in + c.
    w6 = weight.reshape(c_out, c_in, 2, 2, 2, 2)                  # (co,c,a,p,b,q)
    wcat = jnp.transpose(w6, (2, 4, 3, 5, 1, 0)).reshape(16 * c_in, c_out)
    wcat = jnp.pad(wcat, ((0, 0), (0, c_out_pad - c_out))).astype(jnp.bfloat16)

    # ---- VMEM budget: block footprints + in-kernel temporaries + margin ----
    out_isz = jnp.dtype(out_dtype).itemsize
    est = (2 * _padded_bytes((1, lin_pad, cin4), 2)               # input blocks
           + 2 * _padded_bytes((16 * c_in, c_out_pad), 2)         # weight slab
           + 2 * _padded_bytes((1, l_out, c_out_pad), out_isz)    # output blocks
           + _padded_bytes((l_out, 16 * c_in), 2)                 # xcat staging
           + 4 * _padded_bytes((l_out, c_out_pad), 4)             # acc/centered/y/tmp
           + (4 << 20))
    try:
        cap = int(pltpu.get_tpu_info().vmem_capacity_bytes)
    except Exception:
        cap = 64 << 20
    vmem_limit = int(min(max(est, 32 << 20), int(0.85 * cap)))

    kernel = functools.partial(_unet_down_kernel, wh=wh, w_out=w_out, h_out=h_out)
    out = pl.pallas_call(
        kernel,
        out_shape=jax.ShapeDtypeStruct((n, l_out, c_out_pad), out_dtype),
        grid_spec=pltpu.PrefetchScalarGridSpec(
            num_scalar_prefetch=0,
            grid=(n,),
            in_specs=[
                # One packed padded sample per grid step.
                pl.BlockSpec((1, lin_pad, cin4), lambda i: (i, 0, 0)),
                # Grid-invariant tap-stacked weight slab.
                pl.BlockSpec((16 * c_in, c_out_pad), lambda i: (0, 0)),
            ],
            out_specs=pl.BlockSpec((1, l_out, c_out_pad), lambda i: (i, 0, 0)),
        ),
        compiler_params=pltpu.CompilerParams(
            dimension_semantics=("parallel",),
            vmem_limit_bytes=vmem_limit),
    )(s2d, wcat)

    out = out.reshape(n, h_out, wh, c_out_pad)[:, :, :w_out, :c_out]   # NHWC
    if channels_last_out:
        return out
    return jnp.transpose(out, (0, 3, 1, 2))                           # NCHW


def _reference(x, weight):
    """Pure-JAX reference. Inputs are rounded to bf16 (as the kernel feeds the
    MXU) but all math is f32, so the comparison is tight."""
    xb = x.astype(jnp.bfloat16).astype(jnp.float32)
    wb = weight.astype(jnp.bfloat16).astype(jnp.float32)
    y = jax.lax.conv_general_dilated(
        xb, wb, window_strides=(STRIDE, STRIDE),
        padding=((PAD, PAD), (PAD, PAD)),
        dimension_numbers=("NCHW", "OIHW", "NCHW"),
        precision=jax.lax.Precision.HIGHEST)
    mean = jnp.mean(y, axis=(2, 3), keepdims=True)
    var = jnp.mean((y - mean) ** 2, axis=(2, 3), keepdims=True)
    y_hat = (y - mean) * jax.lax.rsqrt(var + EPS)
    return jnp.where(y_hat >= 0, y_hat, NEG_SLOPE * y_hat)


if __name__ == "__main__":
    key = jax.random.PRNGKey(0)
    kx, kw = jax.random.split(key)

    N, C_in, H, W = 2, 4, 16, 16
    C_out = 8

    x = jax.random.normal(kx, (N, C_in, H, W), dtype=jnp.float32)
    # Deterministic synthetic weights (nn.Conv2d(in, out, 4, bias=False) shape).
    weight = 0.1 * jax.random.normal(kw, (C_out, C_in, K, K), dtype=jnp.float32)

    out = jax.block_until_ready(unet_down(x, weight))
    ref = jax.block_until_ready(_reference(x, weight))

    assert out.shape == (N, C_out, H // 2, W // 2)
    max_err = float(jnp.max(jnp.abs(out - ref)))
    assert max_err < 2e-3, f"max abs err {max_err}"

    print("KERNEL_OK")
</pallas_src>

<mosaic_0001>
module attributes {stable_mosaic.version = 11 : i64} {
  func.func @_unet_down_kernel(%arg0: i32, %arg1: memref<1x88x16xbf16, #tpu.memory_space<vmem>>, %arg2: memref<64x128xbf16, #tpu.memory_space<vmem>>, %arg3: memref<1x72x128xf32, #tpu.memory_space<vmem>>) attributes {dimension_semantics = [#tpu.dimension_semantics<parallel>], iteration_bounds = array<i64: 2>, scalar_prefetch = 0 : i64, scratch_operands = 0 : i64, tpu.core_type = #tpu.core_type<tc>, window_params = [{transform_indices = @transform_0, window_bounds = array<i64: 1, 88, 16>}, {pipeline_mode = #tpu.pipeline_mode<synchronous>, transform_indices = @transform_1, window_bounds = array<i64: 64, 128>}, {transform_indices = @transform_2, window_bounds = array<i64: 1, 72, 128>}]} {
    %c0 = arith.constant 0 : index
    %c0_0 = arith.constant 0 : index
    %c0_1 = arith.constant 0 : index
    %0 = vector.load %arg1[%c0, %c0_0, %c0_1] : memref<1x88x16xbf16, #tpu.memory_space<vmem>>, vector<1x88x16xbf16>
    %1 = vector.shape_cast %0 : vector<1x88x16xbf16> to vector<88x16xbf16>
    %2 = vector.extract_strided_slice %1 {offsets = [0, 0], sizes = [72, 16], strides = [1, 1]} : vector<88x16xbf16> to vector<72x16xbf16>
    %3 = vector.extract_strided_slice %1 {offsets = [1, 0], sizes = [72, 16], strides = [1, 1]} : vector<88x16xbf16> to vector<72x16xbf16>
    %4 = vector.extract_strided_slice %1 {offsets = [9, 0], sizes = [72, 16], strides = [1, 1]} : vector<88x16xbf16> to vector<72x16xbf16>
    %5 = vector.extract_strided_slice %1 {offsets = [10, 0], sizes = [72, 16], strides = [1, 1]} : vector<88x16xbf16> to vector<72x16xbf16>
    %6 = tpu.concatenate %2, %3, %4, %5 in 1 : vector<72x16xbf16>, vector<72x16xbf16>, vector<72x16xbf16>, vector<72x16xbf16> -> vector<72x64xbf16>
    %c0_2 = arith.constant 0 : index
    %c0_3 = arith.constant 0 : index
    %7 = vector.load %arg2[%c0_2, %c0_3] : memref<64x128xbf16, #tpu.memory_space<vmem>>, vector<64x128xbf16>
    %cst = arith.constant dense<0.000000e+00> : vector<72x128xf32>
    %8 = tpu.matmul %6, %7, %cst {dimension_numbers = #tpu.dot_dimension_numbers<[1], [0], [0], [1], [0, 0, 1, 1], [], []>} : vector<72x64xbf16>, vector<64x128xbf16>, vector<72x128xf32> -> vector<72x128xf32>
    %9 = tpu.iota {dimensions = array<i32: 0>} : vector<72x1xi32>
    %c9_i32 = arith.constant 9 : i32
    %c0_i32 = arith.constant 0 : i32
    %10 = arith.cmpi eq, %c9_i32, %c0_i32 : i32
    %c1_i32 = arith.constant 1 : i32
    %11 = arith.select %10, %c1_i32, %c9_i32 : i32
    %12 = vector.broadcast %11 : i32 to vector<72x1xi32>
    %13 = arith.remsi %9, %12 : vector<72x1xi32>
    %c0_i32_4 = arith.constant 0 : i32
    %14 = vector.broadcast %c0_i32_4 : i32 to vector<72x1xi32>
    %15 = arith.cmpi ne, %13, %14 : vector<72x1xi32>
    %c0_i32_5 = arith.constant 0 : i32
    %16 = vector.broadcast %c0_i32_5 : i32 to vector<72x1xi32>
    %17 = arith.cmpi slt, %13, %16 : vector<72x1xi32>
    %c0_i32_6 = arith.constant 0 : i32
    %18 = arith.cmpi slt, %11, %c0_i32_6 : i32
    %19 = vector.broadcast %18 : i1 to vector<72x1xi1>
    %20 = vector.broadcast %19 : vector<72x1xi1> to vector<72x1xi1>
    %21 = arith.xori %17, %20 : vector<72x1xi1>
    %22 = arith.andi %21, %15 : vector<72x1xi1>
    %23 = vector.broadcast %11 : i32 to vector<72x1xi32>
    %24 = arith.addi %13, %23 : vector<72x1xi32>
    %25 = arith.select %22, %24, %13 : vector<72x1xi1>, vector<72x1xi32>
    %c8_i32 = arith.constant 8 : i32
    %26 = vector.broadcast %c8_i32 : i32 to vector<72x1xi32>
    %27 = arith.cmpi slt, %25, %26 : vector<72x1xi32>
    %cst_7 = arith.constant 0.000000e+00 : f32
    %28 = vector.shape_cast %27 : vector<72x1xi1> to vector<72x1xi1>
    %29 = vector.broadcast %28 : vector<72x1xi1> to vector<72x128xi1>
    %30 = vector.broadcast %cst_7 : f32 to vector<72x128xf32>
    %31 = arith.select %29, %8, %30 : vector<72x128xi1>, vector<72x128xf32>
    %cst_8 = arith.constant dense<0.000000e+00> : vector<128xf32>
    %32 = vector.multi_reduction <add>, %31, %cst_8 [0] : vector<72x128xf32> to vector<128xf32>
    %33 = vector.shape_cast %32 : vector<128xf32> to vector<1x128xf32>
    %cst_9 = arith.constant 1.562500e-02 : f32
    %34 = vector.broadcast %cst_9 : f32 to vector<1x128xf32>
    %35 = arith.mulf %33, %34 : vector<1x128xf32>
    %36 = vector.broadcast %35 : vector<1x128xf32> to vector<72x128xf32>
    %37 = arith.subf %8, %36 : vector<72x128xf32>
    %38 = arith.mulf %37, %37 : vector<72x128xf32>
    %cst_10 = arith.constant 0.000000e+00 : f32
    %39 = vector.shape_cast %27 : vector<72x1xi1> to vector<72x1xi1>
    %40 = vector.broadcast %39 : vector<72x1xi1> to vector<72x128xi1>
    %41 = vector.broadcast %cst_10 : f32 to vector<72x128xf32>
    %42 = arith.select %40, %38, %41 : vector<72x128xi1>, vector<72x128xf32>
    %cst_11 = arith.constant dense<0.000000e+00> : vector<128xf32>
    %43 = vector.multi_reduction <add>, %42, %cst_11 [0] : vector<72x128xf32> to vector<128xf32>
    %44 = vector.shape_cast %43 : vector<128xf32> to vector<1x128xf32>
    %cst_12 = arith.constant 1.562500e-02 : f32
    %45 = vector.broadcast %cst_12 : f32 to vector<1x128xf32>
    %46 = arith.mulf %44, %45 : vector<1x128xf32>
    %cst_13 = arith.constant 9.99999974E-6 : f32
    %47 = vector.broadcast %cst_13 : f32 to vector<1x128xf32>
    %48 = arith.addf %46, %47 : vector<1x128xf32>
    %49 = math.rsqrt %48 : vector<1x128xf32>
    %50 = vector.broadcast %49 : vector<1x128xf32> to vector<72x128xf32>
    %51 = arith.mulf %37, %50 : vector<72x128xf32>
    %cst_14 = arith.constant 0.000000e+00 : f32
    %52 = vector.broadcast %cst_14 : f32 to vector<72x128xf32>
    %53 = arith.cmpf oge, %51, %52 : vector<72x128xf32>
    %cst_15 = arith.constant 2.000000e-01 : f32
    %54 = vector.broadcast %cst_15 : f32 to vector<72x128xf32>
    %55 = arith.mulf %54, %51 : vector<72x128xf32>
    %56 = arith.select %53, %51, %55 : vector<72x128xi1>, vector<72x128xf32>
    %c0_16 = arith.constant 0 : index
    %c0_17 = arith.constant 0 : index
    %c0_18 = arith.constant 0 : index
    %57 = vector.load %arg3[%c0_16, %c0_17, %c0_18] : memref<1x72x128xf32, #tpu.memory_space<vmem>>, vector<1x72x128xf32>
    %58 = vector.shape_cast %57 : vector<1x72x128xf32> to vector<72x128xf32>
    %59 = vector.shape_cast %56 : vector<72x128xf32> to vector<1x72x128xf32>
    tpu.vector_store %arg3[%c0_16, %c0_17, %c0_18], %59 {strides = array<i32>} : memref<1x72x128xf32, #tpu.memory_space<vmem>>, vector<1x72x128xf32>,
    return
  }
  func.func @transform_0(%arg0: i32) -> (i32, i32, i32) {
    %c0_i32 = arith.constant 0 : i32
    %c0_i32_0 = arith.constant 0 : i32
    %c0_i32_1 = arith.constant 0 : i32
    return %arg0, %c0_i32, %c0_i32_0 : i32, i32, i32
  }
  func.func @transform_1(%arg0: i32) -> (i32, i32) {
    %c0_i32 = arith.constant 0 : i32
    %c0_i32_0 = arith.constant 0 : i32
    %c0_i32_1 = arith.constant 0 : i32
    return %c0_i32, %c0_i32_0 : i32, i32
  }
  func.func @transform_2(%arg0: i32) -> (i32, i32, i32) {
    %c0_i32 = arith.constant 0 : i32
    %c0_i32_0 = arith.constant 0 : i32
    %c0_i32_1 = arith.constant 0 : i32
    return %arg0, %c0_i32, %c0_i32_0 : i32, i32, i32
  }
}

</mosaic_0001>

<bundles_post_ra>
// kernel: tpu_custom_call.1
= control target key start
LH: loop header
LB: loop body
LE: loop exit
PB: predicated region body
PF: predicated region fallthrough
CT: control target
= control target key end

     0   :  { %7 = vsyncpa [#allocation3], 0  ;;  %s1488_s0 = inlined_call_operand.vmem [shape: bf16[2,88,16], index: 0, kind: input, shape index: {}]   ;;  %s1489_s1 = inlined_call_operand.vmem [shape: bf16[64,128], index: 1, kind: input, shape index: {}]   ;;  %s1490_s2 = inlined_call_operand.hbm [shape: f32[2,72,128], index: 2, kind: output, shape index: {}]  }
   0x1   :  { %9 = vsyncpa [#allocation3 + $0x1], 0  ;;  %s1067_s9 = smov 0   ;;  %s1069_s10 = smov 0  }
   0x2   :  { %s1071_s11 = smov 0   ;;  %s1073_s12 = smov 0  }
   0x3 LB: > { %s1088_s13 = sadd.s32 4294967295, %s1042_s12   ;;  %s825_s14 = sadd.s32 4294967294, %s1042_s12   ;;  %s1042_s12 = sphi %s1073_s12, %s1530_s12   ;;  %s1038_s11 = sphi %s1071_s11, %s1529_s11   ;;  %s1034_s10 = sphi %s1069_s10, %s1528_s10   ;;  %s1030_s9 = sphi %s1067_s9, %s1527_s9  }
   0x4   : > { %s1092_s15 = sadd.s32 1, %s1042_s12   ;;  %s69_s16 = sadd.s32 1, %s1038_s11 }
   0x5   : > { %s66_s17 = ssub.s32 %s1042_s12, %s1092_s15  ;;  %p79_p0 = scmp.ne.s32.totalorder %s1038_s11, %s1034_s10 }
   0x6   : > { %p67_p1 = scmp.eq.s32.totalorder %s66_s17, 0  ;;  %p80_p2 = scmp.eq.s32.totalorder %s1088_s13, 1 }
   0x7   : > { %p85_p3 = scmp.ne.s32.totalorder %s1034_s10, %s1030_s9  ;;  %p86_p4 = scmp.eq.s32.totalorder %s825_s14, 1 }
   0x8   : > { %s1103_s18 = scalar_select %p67_p1, %s1038_s11, %s69_s16  }
   0x9   : > { %p1105_p5 = por %p80_p2, %p79_p0  ;;  %p1109_p6 = por %p86_p4, %p85_p3 }
   0xa   : > { %p828_p7 = scmp.ge.s32.totalorder %s1042_s12, 1  ;;  %p115_p8 = scmp.lt.s32.totalorder %s1042_s12, 3 }
   0xc   : > { %p116_p9 = pnand %p828_p7, %p115_p8 }
   0xd   : > { %p137_p10 = scmp.lt.s32.totalorder (!%p116_p9), %s1088_s13, 1  ;;  %s1045_s6 = smov (!%p116_p9), 48  }
   0xe   : > { %119 = sbr.rel (%p116_p9) target bundleno = 469 (0x1d5), region = 28  ;;  %s1046_s7 = smov (!%p116_p9), 16  }
   0xf   : > { %s1047_s8 = smov (!%p116_p9), 32   ;;  %s134_s14 = sand.u32 (!%p116_p9), 1, %s1034_s10  }
  0x10   : > { %s898_s16 = smul.u32 (!%p116_p9), 72, %s134_s14  ;;  %s1448_s25 = scalar_lea.sflag (!%p116_p9), [#allocation3], %s134_s14 }
  0x11   : > { %s918_s17 = smul.u32 (!%p116_p9), 1152, %s1088_s13  ;;  %s1049_s27 = smov (!%p116_p9), [#allocation2]  }
  0x12   : > { %s986_s28 = sshll.u32 (!%p116_p9), %s1049_s27, 4  ;;  %s987_s28 = int_to_ptr.vmem [resolvable:$false] %s986_s28 }
  0x13   : > { %v1044_v0 = vmov 0.0   ;;  %s138_s21 = scalar_select %p137_p10, %s1088_s13, 1  ;;  %v975_v1 = vld [vmem:[%s1489_s1 + $0x18] sm:$0xff]   ;;  %v976_v2 = vld [vmem:[%s1489_s1 + $0x10] sm:$0xff]   ;;  %vm286_vm0 = vcmask 1046528   ;;  %v977_v3 = vld [vmem:[%s1489_s1 + $0x8] sm:$0xff]  }
  0x14   : > { %862 = vmatprep.subr.bf16.mxu0 %v1044_v0  ;;  %890 = vmatprep.subr.bf16.mxu1 %v1044_v0  ;;  %vm180_vm1 = vsmask.f32 7424  ;;  %v978_v24 = vld [vmem:[%s1489_s1] sm:$0xff]   ;;  %vm1048_vm2 = vmmov 0   ;;  %vm306_vm3 = vcmask 130048   ;;  %vm318_vm4 = vcmask 261120  }
  0x15   : > { %s899_s24 = smul.u32 44, %s138_s21  ;;  %863 = vmatpush3.bf16.msra.mxu0 %v975_v1  ;;  %894 = vmatpush3.bf16.msra.mxu1 %v975_v1  ;;  %vm329_vm5 = vcmask 392192   ;;  %vm372_vm6 = vcmask 523264   ;;  %s1418_s21 = scalar_lea.vmem [#allocation2], %s898_s16 }
  0x16   : > { %864 = vmatprep.subr.bf16.mxu0 %v1044_v0  ;;  %891 = vmatprep.subr.bf16.mxu1 %v1044_v0  ;;  %s763_s22 = sshll.u32 %s1418_s21, 4  ;;  %s1431_s22 = int_to_ptr.vmem [resolvable:$true] %s763_s22 }
  0x17   : > { %s1130_s29 = scalar_lea.vmem %s1488_s0, %s899_s24  ;;  %870 = vmatprep.mubr.msk.bf16.mxu0 %vm1048_vm2, %v1044_v0  ;;  %882 = vmatprep.mubr.msk.bf16.mxu1 %vm1048_vm2, %v1044_v0  ;;  %s1429_s24 = scalar_lea.hbm %s1490_s2, %s918_s17 }
  0x18   : > { %v144_v4 = vld [vmem:[%s1130_s29 + $0x4] sm:$0xf]  ;;  %v145_v5 = vld [vmem:[%s1130_s29 + $0x8] sm:$0xf]  ;;  %v146_v6 = vld [vmem:[%s1130_s29 + $0xc] sm:$0xf]  ;;  %p989_p0 = scmp.lt.s32.totalorder %s1431_s22, %s987_s28 }
  0x19   : > { %v147_v7 = vld [vmem:[%s1130_s29 + $0x10] sm:$0xf]  ;;  %v836_v8 = vcombine.low %v144_v4, %v145_v5  ;;  %v143_v9 = vld [vmem:[%s1130_s29] sm:$0xf]  ;;  %v1140_v10 = vcombine.low %v145_v5, %v146_v6  ;;  %v148_v11 = vld [vmem:[%s1130_s29 + $0x14] sm:$0xf]  ;;  %865 = vmatpush3.bf16.msra.mxu0 %v976_v2  ;;  %895 = vmatpush3.bf16.msra.mxu1 %v976_v2 }
  0x1a   : > { %v837_v12 = vcombine.low %v146_v6, %v147_v7  ;;  %v1143_v13 = vcombine.low %v143_v9, %v144_v4  ;;  %v149_v14 = vld [vmem:[%s1130_s29 + $0x18] sm:$0xf]  ;;  %v1146_v15 = vcombine.low %v147_v7, %v148_v11  ;;  %866 = vmatprep.subr.bf16.mxu0 %v1044_v0  ;;  %892 = vmatprep.subr.bf16.mxu1 %v1044_v0  ;;  %v150_v29 = vld [vmem:[%s1130_s29 + $0x1c] sm:$0xf]  ;;  %v1161_v34 = vld [vmem:[%s1130_s29 + $0x20] sm:$0xf] }
  0x1b   : > { %v287_v16 = vrot.slane %v836_v8, 1  ;;  %v189_v17 = vshll.u32 %v1140_v10, 16  ;;  %v838_v18 = vcombine.low %v148_v11, %v149_v14  ;;  %v238_v19 = vshrl.u32 %v836_v8, 16  ;;  %v152_v45 = vld [vmem:[%s1130_s29 + $0x24] sm:$0xf]  ;;  %s982_s26 = scalar_lea.vmem %s1431_s22, 1152 }
  0x1c   : > { %v288_v20 = vrot.slane %v837_v12, 1  ;;  %v182_v21 = vshrl.u32 %v1143_v13, 16  ;;  %v184_v22 = vshll.u32 %v1143_v13, 16  ;;  %v240_v23 = vshll.u32 %v836_v8, 16  ;;  %v153_v57 = vld [vmem:[%s1130_s29 + $0x28] sm:$0xf]  ;;  %p983_p11 = scmp.ne.s32.totalorder %s1431_s22, %s982_s26 }
  0x1d   : > { %v191_v25 = vrot.slane %v189_v17, 1  ;;  %v290_v26 = vrot.slane %v838_v18, 1  ;;  %v245_v27 = vshll.u32 %v837_v12, 16  ;;  %v193_v28 = vshrl.u32 %v1140_v10, 16  ;;  %867 = vmatpush3.bf16.msra.mxu0 %v977_v3  ;;  %896 = vmatpush3.bf16.msra.mxu1 %v977_v3  ;;  %s988_s29 = scalar_lea.vmem %s987_s28, 2304 }
  0x1e   : > { %v289_v30 = vsel %vm286_vm0, %v287_v16, %v288_v20  ;;  %v186_v31 = vrot.slane %v184_v22, 1  ;;  %v242_v32 = vrot.slane %v240_v23, 1  ;;  %v197_v33 = vshll.u32 %v1146_v15, 16  ;;  %868 = vmatprep.subr.bf16.mxu0 %v1044_v0  ;;  %893 = vmatprep.subr.bf16.mxu1 %v1044_v0  ;;  %p984_p12 = pnand %p983_p11, %p1105_p5  ;;  %p990_p1 = scmp.lt.s32.totalorder %s988_s29, %s982_s26 }
  0x1f   : > { %296 = vrot.lane.b32.xlu1 %v289_v30, %s1045_s6  ;;  %v291_v35 = vsel %vm286_vm0, %v288_v20, %v290_v26  ;;  %v247_v36 = vrot.slane %v245_v27, 1  ;;  %v195_v37 = vor.u32 %v193_v28, %v191_v25  ;;  %v249_v38 = vshrl.u32 %v837_v12, 16 }
  0x20   : > { %v187_v39 = vor.u32 %v186_v31, %v182_v21  ;;  %v243_v40 = vor.u32 %v242_v32, %v238_v19  ;;  %v199_v41 = vrot.slane %v197_v33, 1  ;;  %v253_v42 = vshll.u32 %v838_v18, 16  ;;  %p985_p13 = pneg %p984_p12  ;;  %p991_p2 = por %p990_p1, %p989_p0 }
  0x21   : > { %v839_v43 = vcombine.low %v150_v29, %v1161_v34  ;;  %v1168_v44 = vcombine.low %v149_v14, %v150_v29  ;;  %869 = vmatpush3.bf16.msra.mxu0 %v978_v24  ;;  %897 = vmatpush3.bf16.msra.mxu1 %v978_v24  ;;  %v251_v47 = vor.u32 %v249_v38, %v247_v36  ;;  %v201_v48 = vshrl.u32 %v1146_v15, 16 }
  0x22   : > { %v192_v46 = vsel %vm180_vm1, %v187_v39, %v191_v25  ;;  %v248_v49 = vsel %vm180_vm1, %v243_v40, %v247_v36  ;;  %v255_v50 = vrot.slane %v253_v42, 1  ;;  %v200_v53 = vsel %vm180_vm1, %v195_v37, %v199_v41  ;;  %p992_p3 = pnand %p991_p2, %p985_p13 }
  0x23   : > { %220 = vrot.lane.b32.xlu0 %v192_v46, %s1046_s7  ;;  %298 = vrot.lane.b32.xlu1 %v291_v35, %s1045_s6  ;;  %v292_v51 = vrot.slane %v839_v43, 1  ;;  %v205_v52 = vshll.u32 %v1168_v44, 16  ;;  %v257_v54 = vshrl.u32 %v838_v18, 16  ;;  %v261_v55 = vshll.u32 %v839_v43, 16 }
  0x24   : > { %v835_v56 = vcombine.low %v1161_v34, %v152_v45  ;;  %v203_v58 = vor.u32 %v201_v48, %v199_v41  ;;  %v256_v59 = vsel %vm180_vm1, %v251_v47, %v255_v50  ;;  %v209_v62 = vshrl.u32 %v1168_v44, 16 }
  0x25   : > { %v293_v60 = vsel %vm286_vm0, %v290_v26, %v292_v51  ;;  %v207_v61 = vrot.slane %v205_v52, 1  ;;  %v259_v63 = vor.u32 %v257_v54, %v255_v50  ;;  %v263_v1 = vrot.slane %v261_v55, 1 }
  0x26   : > { %v213_v2 = vshll.u32 %v835_v56, 16  ;;  %v840_v3 = vcombine.low %v152_v45, %v153_v57  ;;  %v265_v6 = vshrl.u32 %v839_v43, 16  ;;  %v217_v19 = vshrl.u32 %v835_v56, 16 }
  0x27   : > { %276 = vrot.lane.b32.xlu0 %v248_v49, %s1047_s8  ;;  %222 = vrot.lane.b32.xlu1 %v200_v53, %s1046_s7  ;;  %v208_v4 = vsel %vm180_vm1, %v203_v58, %v207_v61  ;;  %v211_v5 = vor.u32 %v209_v62, %v207_v61  ;;  %v264_v7 = vsel %vm180_vm1, %v259_v63, %v263_v1 }
  0x28   : > { %v215_v8 = vrot.slane %v213_v2, 1  ;;  %v269_v9 = vshll.u32 %v840_v3, 16  ;;  %v294_v11 = vrot.slane %v840_v3, 1  ;;  %v273_v12 = vshrl.u32 %v840_v3, 16 }
  0x29   : > { %v267_v16 = vor.u32 %v265_v6, %v263_v1  ;;  %v834_v45 = vcombine.low %v1161_v34, %v1161_v34 }
  0x2a   : > { %v216_v14 = vsel %vm180_vm1, %v211_v5, %v215_v8  ;;  %v271_v17 = vrot.slane %v269_v9, 1  ;;  %v295_v18 = vsel %vm286_vm0, %v292_v51, %v294_v11  ;;  %v219_v22 = vor.u32 %v217_v19, %v215_v8 }
  0x2b   : > { %278 = vrot.lane.b32.xlu0 %v256_v59, %s1047_s8  ;;  %300 = vrot.lane.b32.xlu1 %v293_v60, %s1045_s6  ;;  %v455_v51 = vlaneseq }
  0x2c   : > { %v275_v20 = vor.u32 %v273_v12, %v271_v17  ;;  %v272_v21 = vsel %vm180_vm1, %v267_v16, %v271_v17 }
  0x2d   : > { %v456_v52 = vshrl.u32 %v455_v51, 7 }
  0x2f   : > { %224 = vrot.lane.b32.xlu0 %v208_v4, %s1046_s7  ;;  %280 = vrot.lane.b32.xlu1 %v264_v7, %s1047_s8  ;;  %v457_v53 = vadd.s32 8, %v456_v52  ;;  %v458_v54 = vadd.s32 16, %v456_v52  ;;  %v459_v57 = vadd.s32 24, %v456_v52  ;;  %v461_v3 = vadd.s32 40, %v456_v52 }
  0x30   : > { %v1239_v58 = vmul.u32.u64.low 3817748708, %v456_v52  ;;  %v1240_v59 = vmul.u32.u64.high 3817748708, %v456_v52, %v1239_v58  ;;  %v462_v5 = vadd.s32 48, %v456_v52 }
  0x31   : > { %v1236_v55 = vmul.u32.u64.low 3817748708, %v457_v53  ;;  %v1237_v56 = vmul.u32.u64.high 3817748708, %v457_v53, %v1236_v55  ;;  %v1242_v60 = vmul.u32.u64.low 3817748708, %v458_v54  ;;  %v1243_v61 = vmul.u32.u64.high 3817748708, %v458_v54, %v1242_v60 }
  0x32   : > { %v1245_v62 = vmul.u32.u64.low 3817748708, %v459_v57  ;;  %v1246_v63 = vmul.u32.u64.high 3817748708, %v459_v57, %v1245_v62  ;;  %v471_v6 = vshrl.u32 %v1240_v59, 3 }
  0x33   : > { %226 = vrot.lane.b32.xlu0 %v216_v14, %s1046_s7  ;;  %302 = vrot.lane.b32.xlu1 %v295_v18, %s1045_s6  ;;  %v482_v4 = vshrl.u32 %v1237_v56, 3  ;;  %v1253_v7 = vmul.u32.u64.low 3817748708, %v461_v3  ;;  %v1254_v8 = vmul.u32.u64.high 3817748708, %v461_v3, %v1253_v7  ;;  %v493_v9 = vshrl.u32 %v1243_v61, 3 }
  0x34   : > { %v504_v14 = vshrl.u32 %v1246_v63, 3  ;;  %v1260_v16 = vmul.u32.u64.low 3817748708, %v462_v5  ;;  %v1261_v17 = vmul.u32.u64.high 3817748708, %v462_v5, %v1260_v16  ;;  %v1263_v18 = vadd.s32 64, %v456_v52 }
  0x35   : > { %v483_v12 = vmul.u32 9, %v482_v4  ;;  %v472_v19 = vmul.u32 9, %v471_v6 }
  0x37   : > { %282 = vrot.lane.b32.xlu0 %v272_v21, %s1047_s8  ;;  %284 = vrot.lane.b32.xlu1 %v275_v20, %s1047_s8  ;;  %v494_v21 = vmul.u32 9, %v493_v9 }
  0x3b   : > { %228 = vrot.lane.b32.xlu0 %v219_v22, %s1046_s7 }
  0x3f   : > { %304 = vrot.lane.b32.xlu0 %v294_v11, %s1045_s6  ;;  %v1257_v11 = vadd.s32 56, %v456_v52 }
  0x91   : > { %v297_v23 = vpop.permute.xlu1 %296 }
  0x95   : > { %v221_v24 = vpop.permute.xlu0 %220  ;;  %v299_v25 = vpop.permute.xlu1 %298 }
  0x96   : > { %v308_v26 = vsel %vm306_vm3, %v1143_v13, %v221_v24  ;;  %v484_v24 = vsub.s32 %v457_v53, %v483_v12 }
  0x98   : > { %vm565_vm7 = vcmp.ne.s32.totalorder %v484_v24, 0  ;;  %vm574_vm8 = vcmp.lt.s32.totalorder %v484_v24, 0 }
  0x99   : > { %v277_v27 = vpop.permute.xlu0 %276  ;;  %v223_v28 = vpop.permute.xlu1 %222  ;;  %vm1281_vm13 = vmand %vm574_vm8, %vm565_vm7 }
  0x9a   : > { %v320_v29 = vsel %vm318_vm4, %v308_v26, %v277_v27  ;;  %v310_v31 = vsel %vm306_vm3, %v1140_v10, %v223_v28  ;;  %v1271_v26 = vmul.u32.u64.low 3817748708, %v1263_v18  ;;  %v1272_v27 = vmul.u32.u64.high 3817748708, %v1263_v18, %v1271_v26 }
  0x9b   : > { %v331_v30 = vsel %vm329_vm5, %v320_v29, %v297_v23  ;;  %v1267_v22 = vmul.u32.u64.low 3817748708, %v1257_v11  ;;  %v1268_v23 = vmul.u32.u64.high 3817748708, %v1257_v11, %v1267_v22  ;;  %v473_v28 = vsub.s32 %v456_v52, %v472_v19 }
  0x9c   : > { %871 = vmatmul.mubr.msk.bf16.vlgmr.msra.gmra.mxu0 %vm372_vm6, %v331_v30  ;;  %v526_v30 = vshrl.u32 %v1254_v8, 3 }
  0x9d   : > { %v279_v32 = vpop.permute.xlu0 %278  ;;  %874 = vmatprep.mubr.msk.bf16.mxu0 %vm1048_vm2, %v1044_v0  ;;  %v301_v33 = vpop.permute.xlu1 %300  ;;  %vm564_vm9 = vcmp.ne.s32.totalorder %v473_v28, 0  ;;  %vm573_vm10 = vcmp.lt.s32.totalorder %v473_v28, 0 }
  0x9e   : > { %v322_v35 = vsel %vm318_vm4, %v310_v31, %v279_v32  ;;  %v495_v31 = vsub.s32 %v458_v54, %v494_v21  ;;  %vm1285_vm14 = vmand %vm573_vm10, %vm564_vm9 }
  0x9f   : > { %v333_v36 = vsel %vm329_vm5, %v322_v35, %v299_v25  ;;  %v505_v25 = vmul.u32 9, %v504_v14 }
  0xa0   : > { %vm566_vm11 = vcmp.ne.s32.totalorder %v495_v31, 0  ;;  %vm575_vm12 = vcmp.lt.s32.totalorder %v495_v31, 0 }
  0xa1   : > { %v225_v13 = vpop.permute.xlu0 %224  ;;  %v281_v37 = vpop.permute.xlu1 %280  ;;  %v506_v32 = vsub.s32 %v459_v57, %v505_v25  ;;  %vm1292_vm1 = vmand %vm575_vm12, %vm566_vm11 }
  0xa2   : > { %v312_v38 = vsel %vm306_vm3, %v1146_v15, %v225_v13 }
  0xa3   : > { %v324_v40 = vsel %vm318_vm4, %v312_v38, %v281_v37  ;;  %v592_v37 = vadd.s32 9, %v484_v24  ;;  %v548_v38 = vshrl.u32 %v1268_v23, 3  ;;  %vm567_vm15 = vcmp.ne.s32.totalorder %v506_v32, 0 }
  0xa4   : > { %875 = vmatmul.mubr.msk.bf16.gmra.mxu0 %vm372_vm6, %v333_v36  ;;  %v335_v15 = vsel %vm329_vm5, %v324_v40, %v301_v33  ;;  %v537_v33 = vshrl.u32 %v1261_v17, 3  ;;  %v527_v36 = vmul.u32 9, %v526_v30  ;;  %vm576_vm0 = vcmp.lt.s32.totalorder %v506_v32, 0 }
  0xa5   : > { %v227_v39 = vpop.permute.xlu0 %226  ;;  %878 = vmatprep.mubr.msk.bf16.mxu0 %vm1048_vm2, %v1044_v0  ;;  %v303_v41 = vpop.permute.xlu1 %302 }
  0xa6   : > { %v314_v10 = vsel %vm306_vm3, %v1168_v44, %v227_v39  ;;  %v591_v39 = vadd.s32 9, %v473_v28 }
  0xa9   : > { %v283_v42 = vpop.permute.xlu0 %282  ;;  %v285_v47 = vpop.permute.xlu1 %284 }
  0xaa   : > { %v326_v43 = vsel %vm318_vm4, %v314_v10, %v283_v42 }
  0xab   : > { %v337_v46 = vsel %vm329_vm5, %v326_v43, %v303_v41  ;;  %v593_v41 = vadd.s32 9, %v495_v31  ;;  %v538_v43 = vmul.u32 9, %v537_v33 }
  0xac   : > { %879 = vmatmul.mubr.msk.bf16.gmra.mxu0 %vm372_vm6, %v335_v15  ;;  %883 = vmatmul.mubr.msk.bf16.vlgmr.msra.gmra.mxu1 %vm372_vm6, %v337_v46 }
  0xad   : > { %v229_v48 = vpop.permute.xlu0 %228  ;;  %886 = vmatprep.mubr.msk.bf16.mxu1 %vm1048_vm2, %v1044_v0  ;;  %v460_v0 = vadd.s32 32, %v456_v52  ;;  %v600_v52 = vsel %vm1285_vm14, %v591_v39, %v473_v28  ;;  %v602_v53 = vsel %vm1292_vm1, %v593_v41, %v495_v31  ;;  %v539_v55 = vsub.s32 %v462_v5, %v538_v43 }
  0xae   : > { %v317_v44 = vsel %vm306_vm3, %v834_v45, %v229_v48  ;;  %v559_v45 = vshrl.u32 %v1272_v27, 3  ;;  %v601_v48 = vsel %vm1281_vm13, %v592_v37, %v484_v24  ;;  %vm1319_vm9 = vcmp.lt.s32.totalorder %v600_v52, 8 }
  0xaf   : > { %v328_v49 = vsel %vm318_vm4, %v317_v44, %v285_v47  ;;  %v1248_v1 = vmul.u32.u64.low 3817748708, %v460_v0  ;;  %v1249_v2 = vmul.u32.u64.high 3817748708, %v460_v0, %v1248_v1  ;;  %v528_v47 = vsub.s32 %v461_v3, %v527_v36  ;;  %vm1298_vm4 = vmand %vm576_vm0, %vm567_vm15 }
  0xb0   : > { %v594_v44 = vadd.s32 9, %v506_v32  ;;  %v560_v56 = vmul.u32 9, %v559_v45  ;;  %vm1323_vm10 = vcmp.lt.s32.totalorder %v602_v53, 8  ;;  %vm570_vm11 = vcmp.ne.s32.totalorder %v539_v55, 0 }
  0xb1   : > { %v305_v50 = vpop.permute.xlu0 %304  ;;  %v515_v20 = vshrl.u32 %v1249_v2, 3  ;;  %vm569_vm7 = vcmp.ne.s32.totalorder %v528_v47, 0  ;;  %vm578_vm8 = vcmp.lt.s32.totalorder %v528_v47, 0  ;;  %v596_v1 = vadd.s32 9, %v528_v47 }
  0xb2   : > { %v339_v34 = vsel %vm329_vm5, %v328_v49, %v305_v50  ;;  %v549_v49 = vmul.u32 9, %v548_v38  ;;  %v603_v59 = vsel %vm1298_vm4, %v594_v44, %v506_v32  ;;  %vm579_vm12 = vcmp.lt.s32.totalorder %v539_v55, 0  ;;  %vm1332_vm13 = vmand %vm578_vm8, %vm569_vm7 }
  0xb3   : > { %v516_v29 = vmul.u32 9, %v515_v20  ;;  %v561_v4 = vsub.s32 %v1263_v18, %v560_v56  ;;  %vm1337_vm14 = vcmp.lt.s32.totalorder %v603_v59, 8  ;;  %v597_v7 = vadd.s32 9, %v539_v55 }
  0xb4   : > { %887 = vmatmul.mubr.msk.bf16.gmra.mxu1 %vm372_vm6, %v339_v34  ;;  %vm1310_vm6 = vcmp.lt.s32.totalorder %v601_v48, 8  ;;  %v605_v17 = vsel %vm1332_vm13, %v596_v1, %v528_v47 }
  0xb5   : > { %v517_v13 = vsub.s32 %v460_v0, %v516_v29  ;;  %v550_v0 = vsub.s32 %v1257_v11, %v549_v49  ;;  %vm581_vm4 = vcmp.lt.s32.totalorder %v561_v4, 0  ;;  %v599_v26 = vadd.s32 9, %v561_v4 }
  0xb6   : > { %vm1367_vm7 = vcmp.lt.s32.totalorder %v605_v17, 8 }
  0xb7   : > { %vm568_vm2 = vcmp.ne.s32.totalorder %v517_v13, 0  ;;  %vm577_vm3 = vcmp.lt.s32.totalorder %v517_v13, 0  ;;  %v595_v51 = vadd.s32 9, %v517_v13  ;;  %vm571_vm15 = vcmp.ne.s32.totalorder %v550_v0, 0 }
  0xb8   : > { %vm1306_vm5 = vmand %vm577_vm3, %vm568_vm2  ;;  %vm580_vm0 = vcmp.lt.s32.totalorder %v550_v0, 0  ;;  %v598_v19 = vadd.s32 9, %v550_v0  ;;  %vm572_vm3 = vcmp.ne.s32.totalorder %v561_v4, 0 }
  0xb9   : > { %v604_v63 = vsel %vm1306_vm5, %v595_v51, %v517_v13  ;;  %vm1351_vm2 = vmand %vm579_vm12, %vm570_vm11 }
  0xba   : > { %vm1347_vm1 = vcmp.lt.s32.totalorder %v604_v63, 8  ;;  %vm1359_vm5 = vmand %vm580_vm0, %vm571_vm15  ;;  %v606_v25 = vsel %vm1351_vm2, %v597_v7, %v539_v55 }
  0xbb   : > { %vm590_vm8 = vmand %vm581_vm4, %vm572_vm3  ;;  %v607_v31 = vsel %vm1359_vm5, %v598_v19, %v550_v0  ;;  %vm1373_vm11 = vcmp.lt.s32.totalorder %v606_v25, 8 }
  0xbc   : > { %v608_v38 = vsel %vm590_vm8, %v599_v26, %v561_v4  ;;  %vm1379_vm12 = vcmp.lt.s32.totalorder %v607_v31, 8 }
  0xbd   : > { %vm1385_vm13 = vcmp.lt.s32.totalorder %v608_v38, 8 }
 0x15c   : > { %v1276_v35 = vpop.f32.mrf.mxu0 }
 0x15d   : > { %v636_v8 = vsel %vm1319_vm9, %v1276_v35, 0.0 }
 0x15e   : > { %v872_v10 = vpop.f32.mrf.mxu0 }
 0x160   : > { %v1290_v46 = vpop.f32.mrf.mxu0 }
 0x161   : > { %v637_v2 = vsel %vm1310_vm6, %v1290_v46, 0.0 }
 0x162   : > { %v873_v50 = vpop.f32.mrf.mxu0  ;;  %v645_v11 = vadd.f32 %v637_v2, %v636_v8 }
 0x164   : > { %v1314_v58 = vpop.f32.mrf.mxu0 }
 0x165   : > { %v638_v9 = vsel %vm1323_vm10, %v1314_v58, 0.0 }
 0x166   : > { %v876_v62 = vpop.f32.mrf.mxu0  ;;  %v646_v20 = vadd.f32 %v645_v11, %v638_v9 }
 0x168   : > { %v428_v5 = vpop.f32.mrf.mxu0 }
 0x169   : > { %v639_v18 = vsel %vm1337_vm14, %v428_v5, 0.0 }
 0x16a   : > { %v877_v12 = vpop.f32.mrf.mxu0  ;;  %v647_v27 = vadd.f32 %v646_v20, %v639_v18 }
 0x16c   : > { %v433_v21 = vpop.f32.mrf.mxu0  ;;  %v441_v22 = vpop.f32.mrf.mxu1 }
 0x16d   : > { %v640_v24 = vsel %vm1347_vm1, %v433_v21, 0.0  ;;  %v642_v42 = vsel %vm1373_vm11, %v441_v22, 0.0 }
 0x16e   : > { %v880_v28 = vpop.f32.mrf.mxu0  ;;  %v884_v29 = vpop.f32.mrf.mxu1  ;;  %v648_v32 = vadd.f32 %v647_v27, %v640_v24 }
 0x170   : > { %v436_v13 = vpop.f32.mrf.mxu0  ;;  %v444_v36 = vpop.f32.mrf.mxu1 }
 0x171   : > { %v641_v37 = vsel %vm1367_vm7, %v436_v13, 0.0  ;;  %v643_v47 = vsel %vm1379_vm12, %v444_v36, 0.0 }
 0x172   : > { %v649_v39 = vadd.f32 %v648_v32, %v641_v37  ;;  %v881_v40 = vpop.f32.mrf.mxu0  ;;  %v885_v41 = vpop.f32.mrf.mxu1 }
 0x174   : > { %v650_v43 = vadd.f32 %v649_v39, %v642_v42  ;;  %v449_v45 = vpop.f32.mrf.mxu1 }
 0x175   : > { %v644_v49 = vsel %vm1385_vm13, %v449_v45, 0.0 }
 0x176   : > { %v651_v48 = vadd.f32 %v650_v43, %v643_v47  ;;  %v888_v44 = vpop.f32.mrf.mxu1 }
 0x178   : > { %v652_v50 = vadd.f32 %v651_v48, %v644_v49  ;;  %v452_v34 = vpop.f32.mrf.mxu1 }
 0x17a   : > { %v653_v51 = vrot.slane %v652_v50, 4  ;;  %v889_v52 = vpop.f32.mrf.mxu1 }
 0x17c   : > { %v654_v53 = vadd.f32 %v653_v51, %v652_v50 }
 0x17e   : > { %v655_v54 = vrot.slane %v654_v53, 2 }
 0x180   : > { %v656_v55 = vadd.f32 %v655_v54, %v654_v53 }
 0x182   : > { %v657_v56 = vrot.slane %v656_v55, 1 }
 0x184   : > { %v658_v59 = vadd.f32 %v657_v56, %v656_v55 }
 0x186   : > { %v659_v0 = vmul.f32 0.015625, %v658_v59 }
 0x188   : > { %v660_v62 = vsub.f32 %v1276_v35, %v659_v0  ;;  %v661_v63 = vsub.f32 %v1290_v46, %v659_v0  ;;  %v662_v1 = vsub.f32 %v1314_v58, %v659_v0  ;;  %v663_v2 = vsub.f32 %v428_v5, %v659_v0 }
 0x189   : > { %v664_v7 = vsub.f32 %v433_v21, %v659_v0  ;;  %v665_v12 = vsub.f32 %v436_v13, %v659_v0  ;;  %v666_v18 = vsub.f32 %v441_v22, %v659_v0  ;;  %v667_v5 = vsub.f32 %v444_v36, %v659_v0 }
 0x18a   : > { %v669_v3 = vmul.f32 %v660_v62, %v660_v62  ;;  %v670_v4 = vmul.f32 %v661_v63, %v661_v63  ;;  %v671_v8 = vmul.f32 %v662_v1, %v662_v1  ;;  %v672_v16 = vmul.f32 %v663_v2, %v663_v2 }
 0x18b   : > { %v673_v35 = vmul.f32 %v664_v7, %v664_v7  ;;  %v674_v19 = vmul.f32 %v665_v12, %v665_v12  ;;  %v668_v60 = vsub.f32 %v449_v45, %v659_v0  ;;  %v675_v23 = vmul.f32 %v666_v18, %v666_v18 }
 0x18c   : > { %v678_v9 = vsel %vm1319_vm9, %v669_v3, 0.0  ;;  %v679_v11 = vsel %vm1310_vm6, %v670_v4, 0.0  ;;  %v680_v46 = vsel %vm1323_vm10, %v671_v8, 0.0  ;;  %v681_v20 = vsel %vm1337_vm14, %v672_v16, 0.0 }
 0x18d   : > { %v687_v17 = vadd.f32 %v679_v11, %v678_v9  ;;  %v682_v57 = vsel %vm1347_vm1, %v673_v35, 0.0  ;;  %v676_v25 = vmul.f32 %v667_v5, %v667_v5  ;;  %v683_v22 = vsel %vm1367_vm7, %v674_v19, 0.0 }
 0x18e   : > { %v677_v61 = vmul.f32 %v668_v60, %v668_v60  ;;  %v684_v27 = vsel %vm1373_vm11, %v675_v23, 0.0 }
 0x18f   : > { %v688_v58 = vadd.f32 %v687_v17, %v680_v46  ;;  %v685_v28 = vsel %vm1379_vm12, %v676_v25, 0.0 }
 0x190   : > { %v686_v14 = vsel %vm1385_vm13, %v677_v61, 0.0 }
 0x191   : > { %v689_v21 = vadd.f32 %v688_v58, %v681_v20 }
 0x193   : > { %v690_v24 = vadd.f32 %v689_v21, %v682_v57 }
 0x195   : > { %v691_v26 = vadd.f32 %v690_v24, %v683_v22 }
 0x197   : > { %v692_v6 = vadd.f32 %v691_v26, %v684_v27 }
 0x199   : > { %v693_v29 = vadd.f32 %v692_v6, %v685_v28 }
 0x19b   : > { %v694_v31 = vadd.f32 %v693_v29, %v686_v14 }
 0x19d   : > { %v695_v32 = vrot.slane %v694_v31, 4 }
 0x19f   : > { %v696_v13 = vadd.f32 %v695_v32, %v694_v31 }
 0x1a1   : > { %v697_v30 = vrot.slane %v696_v13, 2 }
 0x1a3   : > { %v698_v36 = vadd.f32 %v697_v30, %v696_v13 }
 0x1a5   : > { %v699_v37 = vrot.slane %v698_v36, 1 }
 0x1a7   : > { %v700_v38 = vadd.f32 %v699_v37, %v698_v36 }
 0x1a9   : > { %v701_v39 = vmul.f32 0.015625, %v700_v38 }
 0x1ab   : > { %v702_v33 = vadd.f32 1e-05, %v701_v39 }
 0x1ad   : > { %980 = vrsqrt.f32 %v702_v33 }
 0x1ba   : > { %v981_v10 = vpop.eup %980 }
 0x1bb   : > { %v704_v40 = vmul.f32 %v981_v10, %v660_v62  ;;  %v705_v41 = vmul.f32 %v981_v10, %v661_v63  ;;  %v706_v42 = vmul.f32 %v981_v10, %v662_v1  ;;  %v707_v43 = vmul.f32 %v981_v10, %v663_v2 }
 0x1bc   : > { %v708_v45 = vmul.f32 %v981_v10, %v664_v7  ;;  %v709_v15 = vmul.f32 %v981_v10, %v665_v12  ;;  %v710_v47 = vmul.f32 %v981_v10, %v666_v18  ;;  %v711_v48 = vmul.f32 %v981_v10, %v667_v5 }
 0x1bd   : > { %v712_v44 = vmul.f32 %v981_v10, %v668_v60  ;;  %vm713_vm6 = vcmp.ge.f32.partialorder %v704_v40, 0.0  ;;  %vm714_vm9 = vcmp.ge.f32.partialorder %v705_v41, 0.0  ;;  %vm715_vm10 = vcmp.ge.f32.partialorder %v706_v42, 0.0 }
 0x1be   : > { %vm716_vm14 = vcmp.ge.f32.partialorder %v707_v43, 0.0  ;;  %vm717_vm15 = vcmp.ge.f32.partialorder %v708_v45, 0.0  ;;  %vm718_vm0 = vcmp.ge.f32.partialorder %v709_v15, 0.0  ;;  %vm719_vm1 = vcmp.ge.f32.partialorder %v710_v47, 0.0 }
 0x1bf   : > { %vm720_vm2 = vcmp.ge.f32.partialorder %v711_v48, 0.0  ;;  %vm721_vm3 = vcmp.ge.f32.partialorder %v712_v44, 0.0  ;;  %v722_v49 = vmul.f32 0.2, %v704_v40  ;;  %v723_v50 = vmul.f32 0.2, %v705_v41 }
 0x1c0   : > { %v724_v34 = vmul.f32 0.2, %v706_v42  ;;  %v725_v51 = vmul.f32 0.2, %v707_v43  ;;  %v726_v52 = vmul.f32 0.2, %v708_v45 }
 0x1c1   : > { %v727_v53 = vmul.f32 0.2, %v709_v15  ;;  %v728_v54 = vmul.f32 0.2, %v710_v47  ;;  %v729_v55 = vmul.f32 0.2, %v711_v48  ;;  %v731_v56 = vsel %vm713_vm6, %v704_v40, %v722_v49 }
 0x1c2   : > { %v730_v59 = vmul.f32 0.2, %v712_v44  ;;  %v732_v0 = vsel %vm714_vm9, %v705_v41, %v723_v50  ;;  %v733_v62 = vsel %vm715_vm10, %v706_v42, %v724_v34  ;;  %v734_v63 = vsel %vm716_vm14, %v707_v43, %v725_v51  ;;  %740 = vst [vmem:[%s1418_s21] sm:$0xff] %v731_v56 }
 0x1c3   : > { %v735_v1 = vsel %vm717_vm15, %v708_v45, %v726_v52  ;;  %v736_v2 = vsel %vm718_vm0, %v709_v15, %v727_v53  ;;  %v737_v3 = vsel %vm719_vm1, %v710_v47, %v728_v54  ;;  %v738_v4 = vsel %vm720_vm2, %v711_v48, %v729_v55  ;;  %741 = vst [vmem:[%s1418_s21 + $0x8] sm:$0xff] %v732_v0 }
 0x1c4   : > { %742 = vst [vmem:[%s1418_s21 + $0x10] sm:$0xff] %v733_v62  ;;  %743 = vst [vmem:[%s1418_s21 + $0x18] sm:$0xff] %v734_v63  ;;  %v739_v7 = vsel %vm721_vm3, %v712_v44, %v730_v59 }
 0x1c5   : > { %744 = vst [vmem:[%s1418_s21 + $0x20] sm:$0xff] %v735_v1  ;;  %745 = vst [vmem:[%s1418_s21 + $0x28] sm:$0xff] %v736_v2 }
 0x1c6   : > { %746 = vst [vmem:[%s1418_s21 + $0x30] sm:$0xff] %v737_v3  ;;  %747 = vst [vmem:[%s1418_s21 + $0x38] sm:$0xff] %v738_v4 }
 0x1c7   : > { %748 = vst [vmem:[%s1418_s21 + $0x40] sm:$0xff] %v739_v7 }
 0x1c8   : > { %995 = shalt.err (!%p992_p3)
}
 0x1c9   : > { %s996_s30 = scalar_lea.hbm %s1429_s24, 1152  ;;  %s1000_s5 = scalar_lea.hbm %s1490_s2, 2304 }
 0x1ca   : > { %p997_p4 = scmp.ne.s32.totalorder %s1429_s24, %s996_s30  ;;  %p1001_p9 = scmp.lt.s32.totalorder %s1429_s24, %s1490_s2 }
 0x1cb   : > { %p1002_p10 = scmp.lt.s32.totalorder %s1000_s5, %s996_s30 }
 0x1cc   : > { %p998_p7 = pnand %p997_p4, %p1105_p5 }
 0x1cd   : > { %p1003_p11 = por %p1002_p10, %p1001_p9 }
 0x1ce   : > { %p999_p8 = pneg %p998_p7 }
 0x1d0   : > { %p1004_p12 = pnand %p1003_p11, %p999_p8 }
 0x1d2   : > { %1007 = shalt.err (!%p1004_p12)
}
 0x1d3   : > { %s1050_s8 = smov 128   ;;  %s1051_s14 = smov 8  }
 0x1d4   : > { %919 = dma.vmem_to_hbm [thread:$0]  (%p1105_p5), %s1431_s22, 1152, %s1429_s24, %s1448_s25, %s1050_s8, %s1050_s8, %s1051_s14  }
 0x1d5 PF: > { %p925_p13 = scmp.ge.s32.totalorder %s1042_s12, 2  ;;  %s778_s16 = sand.u32 1, %s1030_s9  }
 0x1d6   : > { %s779_s17 = scalar_lea.sflag [#allocation3], %s778_s16 }
 0x1d7   : > { %p922_p0 = pnand %p925_p13, %p1109_p6 }
 0x1d9   : > { %p923_p1 = pneg %p922_p0 }
 0x1db   : > { %1025 = dma.done.wait (%p923_p1), %s779_s17, 1152  }
 0x1dc   : > { %1027 = vsyncadd (%p923_p1), %s779_s17, 4294966144  ;;  %p12_p2 = scmp.ge.s32.totalorder %s1092_s15, 4   ;;  %s1527_s9 = smov %s1034_s10 }
 0x1dd   : > { %s1528_s10 = smov %s1038_s11  ;;  %s1529_s11 = smov %s1103_s18 }
 0x1de   : > { %s1530_s12 = smov %s1092_s15  ;;  %14 = sbr.rel (!%p12_p2) target bundleno = 3 (0x3), region = 63 }
 0x1e3   :  { %784 = vsyncpa [#allocation3], 1 }
 0x1e4   :  { %786 = vsyncpa [#allocation3 + $0x1], 1 }

</bundles_post_ra>
